<compile_context>
chip_gen: v7x
topology: tpu7x:2x2x1
jax: 0.10.0
libtpu: 0.0.40
codegen_flags: <defaults>
</compile_context>

<pallas_src>
import functools

import jax
import jax.numpy as jnp
from jax import lax
from jax.experimental import pallas as pl
from jax.experimental.pallas import tpu as pltpu

LOG_STD_MAX = 2.0
LOG_STD_MIN = -5.0

HIDDEN = 256  # fixed by the module definition (nn.Linear(..., 256))

# Value of the log_std squash at a raw value of 0 (rows never selected).
_LOG_STD_AT_ZERO = LOG_STD_MIN + 0.5 * (LOG_STD_MAX - LOG_STD_MIN)  # == -1.5


def _actor_kernel(num_options, act_dim,
                  idx_ref,                     # SMEM (num_options,) int32: first row per option
                  x_ref,                       # VMEM (B, obs_dim) f32
                  w1_ref, b1_ref,              # (O, obs, H) bf16 / (O, H) f32
                  w2_ref, b2_ref,              # (O, H, H)  bf16 / (O, H) f32
                  wh_ref, bh_ref,              # (O, H, 2A) bf16 / (O, 2A) f32  (packed [mean|logstd])
                  out_ref):                    # VMEM (B, 2A) f32, packed [mean | log_std]
    B, two_a = out_ref.shape

    # Unselected rows keep the torch.zeros init:
    #   mean = 0,  log_std = LOG_STD_MIN + 0.5*(MAX-MIN)*(tanh(0)+1) = -1.5
    lane = lax.broadcasted_iota(jnp.int32, (B, two_a), 1)
    out_ref[...] = jnp.where(lane >= act_dim,
                             jnp.float32(_LOG_STD_AT_ZERO),
                             jnp.float32(0.0))

    row_lane = lax.broadcasted_iota(jnp.int32, (1, two_a), 1)

    # num_options is a small static int -> unrolled Python loop (traced once).
    for i in range(num_options):
        r = idx_ref[i]                               # first batch row with o == i
        v = x_ref[pl.ds(r, 1), :]                    # (1, obs_dim) f32

        # bf16 operands into the MXU, f32 accumulation; elementwise stays f32.
        h = jnp.dot(v.astype(jnp.bfloat16), w1_ref[i],
                    preferred_element_type=jnp.float32) + b1_ref[pl.ds(i, 1), :]
        h = jnp.maximum(h, 0.0)                      # F.relu
        h = jnp.dot(h.astype(jnp.bfloat16), w2_ref[i],
                    preferred_element_type=jnp.float32) + b2_ref[pl.ds(i, 1), :]
        h = jnp.maximum(h, 0.0)                      # F.relu

        head = jnp.dot(h.astype(jnp.bfloat16), wh_ref[i],
                       preferred_element_type=jnp.float32) + bh_ref[pl.ds(i, 1), :]  # (1, 2A)

        squashed = LOG_STD_MIN + 0.5 * (LOG_STD_MAX - LOG_STD_MIN) * (jnp.tanh(head) + 1.0)
        row = jnp.where(row_lane >= act_dim, squashed, head)   # mean lanes raw, log_std lanes squashed
        out_ref[pl.ds(r, 1), :] = row                # disjoint rows across options


def actor_forward(x, o, params, num_options):
    """x: (B, obs_dim) f32, o: (B,) int32 option ids in [0, num_options).

    Assumes every option appears at least once in `o` (the PyTorch code raises
    otherwise)."""
    B, obs_dim = x.shape
    act_dim = params["wm"].shape[-1]

    # First-occurrence row index per option (replicates `(o == i).nonzero()[0]`).
    onehot = o[None, :] == jnp.arange(num_options, dtype=o.dtype)[:, None]   # (O, B)
    first_idx = jnp.argmax(onehot, axis=1).astype(jnp.int32)                 # (O,)

    # Fuse the two heads; cast matmul weights to bf16 (biases stay f32).
    w1 = params["w1"].astype(jnp.bfloat16)
    w2 = params["w2"].astype(jnp.bfloat16)
    wh = jnp.concatenate([params["wm"], params["ws"]], axis=-1).astype(jnp.bfloat16)
    bh = jnp.concatenate([params["bm"], params["bs"]], axis=-1)

    vmem = pl.BlockSpec(memory_space=pltpu.MemorySpace.VMEM)
    smem = pl.BlockSpec(memory_space=pltpu.MemorySpace.SMEM)

    kernel = functools.partial(_actor_kernel, num_options, act_dim)
    packed = pl.pallas_call(
        kernel,
        out_shape=jax.ShapeDtypeStruct((B, 2 * act_dim), jnp.float32),
        in_specs=[smem, vmem, vmem, vmem, vmem, vmem, vmem, vmem],
        out_specs=vmem,
    )(first_idx, x, w1, params["b1"], w2, params["b2"], wh, bh)

    return packed[:, :act_dim], packed[:, act_dim:]


def actor_forward_ref(x, o, params, num_options):
    """Pure-JAX (f32) reference mirroring the PyTorch forward (literal semantics)."""
    B = x.shape[0]
    act_dim = params["wm"].shape[-1]
    mean_y = jnp.zeros((B, act_dim), jnp.float32)
    logstd_y = jnp.zeros((B, act_dim), jnp.float32)
    o_np = jax.device_get(o)
    for i in range(num_options):
        idx = int(jnp.argmax(o == i))  # first occurrence
        if o_np[idx] != i:
            continue                   # option absent (PyTorch would raise)
        v = x[idx:idx + 1]
        v = jax.nn.relu(v @ params["w1"][i] + params["b1"][i])
        v = jax.nn.relu(v @ params["w2"][i] + params["b2"][i])
        mean_v = v @ params["wm"][i] + params["bm"][i]
        logstd_v = v @ params["ws"][i] + params["bs"][i]
        mean_y = mean_y.at[idx].set(mean_v[0])
        logstd_y = logstd_y.at[idx].set(logstd_v[0])
    t = jnp.tanh(logstd_y)
    logstd_y = LOG_STD_MIN + 0.5 * (LOG_STD_MAX - LOG_STD_MIN) * (t + 1.0)
    return mean_y, logstd_y


def init_params(key, num_options, obs_dim, act_dim):
    ks = jax.random.split(key, 8)
    scale = 0.1
    return {
        "w1": scale * jax.random.normal(ks[0], (num_options, obs_dim, HIDDEN), jnp.float32),
        "b1": scale * jax.random.normal(ks[1], (num_options, HIDDEN), jnp.float32),
        "w2": scale * jax.random.normal(ks[2], (num_options, HIDDEN, HIDDEN), jnp.float32),
        "b2": scale * jax.random.normal(ks[3], (num_options, HIDDEN), jnp.float32),
        "wm": scale * jax.random.normal(ks[4], (num_options, HIDDEN, act_dim), jnp.float32),
        "bm": scale * jax.random.normal(ks[5], (num_options, act_dim), jnp.float32),
        "ws": scale * jax.random.normal(ks[6], (num_options, HIDDEN, act_dim), jnp.float32),
        "bs": scale * jax.random.normal(ks[7], (num_options, act_dim), jnp.float32),
    }


if __name__ == "__main__":
    key = jax.random.PRNGKey(0)
    k_param, k_x = jax.random.split(key)

    num_options = 3
    obs_dim = 16
    act_dim = 4
    B = 8

    params = init_params(k_param, num_options, obs_dim, act_dim)
    x = jax.random.normal(k_x, (B, obs_dim), jnp.float32)
    # Every option appears at least once (the PyTorch code errors otherwise).
    o = jnp.array([0, 1, 2, 0, 1, 2, 0, 1], dtype=jnp.int32)

    mean, logstd = actor_forward(x, o, params, num_options)
    jax.block_until_ready((mean, logstd))

    mean_ref, logstd_ref = actor_forward_ref(x, o, params, num_options)
    # bf16 matmul weights vs f32 reference -> ~1% relative deviation expected.
    assert jnp.allclose(mean, mean_ref, atol=5e-2, rtol=5e-2), "mean mismatch"
    assert jnp.allclose(logstd, logstd_ref, atol=5e-2, rtol=5e-2), "log_std mismatch"

    # TODO(synk): get_action's Normal.rsample / log_prob sampling path and get_option are
    # not part of forward() and are left out of the kernel.
    print("KERNEL_OK")
</pallas_src>

<mosaic_0001>
module attributes {stable_mosaic.version = 11 : i64} {
  func.func @_actor_kernel(%arg0: memref<3xi32, #tpu.memory_space<smem>>, %arg1: memref<8x16xf32, #tpu.memory_space<vmem>>, %arg2: memref<3x16x256xbf16, #tpu.memory_space<vmem>>, %arg3: memref<3x256xf32, #tpu.memory_space<vmem>>, %arg4: memref<3x256x256xbf16, #tpu.memory_space<vmem>>, %arg5: memref<3x256xf32, #tpu.memory_space<vmem>>, %arg6: memref<3x256x8xbf16, #tpu.memory_space<vmem>>, %arg7: memref<3x8xf32, #tpu.memory_space<vmem>>, %arg8: memref<8x8xf32, #tpu.memory_space<vmem>>) attributes {dimension_semantics = [], scalar_prefetch = 0 : i64, scratch_operands = 0 : i64, tpu.core_type = #tpu.core_type<tc>} {
    %0 = tpu.iota {dimensions = array<i32: 1>} : vector<8x8xi32>
    %c4_i32 = arith.constant 4 : i32
    %1 = vector.broadcast %c4_i32 : i32 to vector<8x8xi32>
    %2 = arith.cmpi sge, %0, %1 : vector<8x8xi32>
    %cst = arith.constant -1.500000e+00 : f32
    %cst_0 = arith.constant 0.000000e+00 : f32
    %3 = vector.broadcast %cst : f32 to vector<8x8xf32>
    %4 = vector.broadcast %cst_0 : f32 to vector<8x8xf32>
    %5 = arith.select %2, %3, %4 : vector<8x8xi1>, vector<8x8xf32>
    %c0 = arith.constant 0 : index
    %c0_1 = arith.constant 0 : index
    %6 = vector.load %arg8[%c0, %c0_1] : memref<8x8xf32, #tpu.memory_space<vmem>>, vector<8x8xf32>
    tpu.vector_store %arg8[%c0, %c0_1], %5 {strides = array<i32>} : memref<8x8xf32, #tpu.memory_space<vmem>>, vector<8x8xf32>,
    %7 = tpu.iota {dimensions = array<i32: 1>} : vector<1x8xi32>
    %c0_2 = arith.constant 0 : index
    %8 = memref.load %arg0[%c0_2] : memref<3xi32, #tpu.memory_space<smem>>
    %9 = arith.index_cast %8 : i32 to index
    %c0_3 = arith.constant 0 : index
    %10 = vector.load %arg1[%9, %c0_3] : memref<8x16xf32, #tpu.memory_space<vmem>>, vector<1x16xf32>
    %11 = arith.truncf %10 : vector<1x16xf32> to vector<1x16xbf16>
    %c0_4 = arith.constant 0 : index
    %c0_5 = arith.constant 0 : index
    %c0_6 = arith.constant 0 : index
    %12 = vector.load %arg2[%c0_4, %c0_5, %c0_6] : memref<3x16x256xbf16, #tpu.memory_space<vmem>>, vector<1x16x256xbf16>
    %13 = vector.shape_cast %12 : vector<1x16x256xbf16> to vector<16x256xbf16>
    %cst_7 = arith.constant dense<0.000000e+00> : vector<1x256xf32>
    %14 = tpu.matmul %11, %13, %cst_7 {dimension_numbers = #tpu.dot_dimension_numbers<[1], [0], [0], [1], [0, 0, 1, 1], [], []>} : vector<1x16xbf16>, vector<16x256xbf16>, vector<1x256xf32> -> vector<1x256xf32>
    %c0_8 = arith.constant 0 : index
    %c0_9 = arith.constant 0 : index
    %15 = vector.load %arg3[%c0_8, %c0_9] : memref<3x256xf32, #tpu.memory_space<vmem>>, vector<1x256xf32>
    %16 = arith.addf %14, %15 : vector<1x256xf32>
    %cst_10 = arith.constant 0.000000e+00 : f32
    %17 = vector.broadcast %cst_10 : f32 to vector<1x256xf32>
    %18 = arith.maximumf %16, %17 : vector<1x256xf32>
    %19 = arith.truncf %18 : vector<1x256xf32> to vector<1x256xbf16>
    %c0_11 = arith.constant 0 : index
    %c0_12 = arith.constant 0 : index
    %c0_13 = arith.constant 0 : index
    %20 = vector.load %arg4[%c0_11, %c0_12, %c0_13] : memref<3x256x256xbf16, #tpu.memory_space<vmem>>, vector<1x256x256xbf16>
    %21 = vector.shape_cast %20 : vector<1x256x256xbf16> to vector<256x256xbf16>
    %cst_14 = arith.constant dense<0.000000e+00> : vector<1x256xf32>
    %22 = tpu.matmul %19, %21, %cst_14 {dimension_numbers = #tpu.dot_dimension_numbers<[1], [0], [0], [1], [0, 0, 1, 1], [], []>} : vector<1x256xbf16>, vector<256x256xbf16>, vector<1x256xf32> -> vector<1x256xf32>
    %c0_15 = arith.constant 0 : index
    %c0_16 = arith.constant 0 : index
    %23 = vector.load %arg5[%c0_15, %c0_16] : memref<3x256xf32, #tpu.memory_space<vmem>>, vector<1x256xf32>
    %24 = arith.addf %22, %23 : vector<1x256xf32>
    %cst_17 = arith.constant 0.000000e+00 : f32
    %25 = vector.broadcast %cst_17 : f32 to vector<1x256xf32>
    %26 = arith.maximumf %24, %25 : vector<1x256xf32>
    %27 = arith.truncf %26 : vector<1x256xf32> to vector<1x256xbf16>
    %c0_18 = arith.constant 0 : index
    %c0_19 = arith.constant 0 : index
    %c0_20 = arith.constant 0 : index
    %28 = vector.load %arg6[%c0_18, %c0_19, %c0_20] : memref<3x256x8xbf16, #tpu.memory_space<vmem>>, vector<1x256x8xbf16>
    %29 = vector.shape_cast %28 : vector<1x256x8xbf16> to vector<256x8xbf16>
    %cst_21 = arith.constant dense<0.000000e+00> : vector<1x8xf32>
    %30 = tpu.matmul %27, %29, %cst_21 {dimension_numbers = #tpu.dot_dimension_numbers<[1], [0], [0], [1], [0, 0, 1, 1], [], []>} : vector<1x256xbf16>, vector<256x8xbf16>, vector<1x8xf32> -> vector<1x8xf32>
    %c0_22 = arith.constant 0 : index
    %c0_23 = arith.constant 0 : index
    %31 = vector.load %arg7[%c0_22, %c0_23] : memref<3x8xf32, #tpu.memory_space<vmem>>, vector<1x8xf32>
    %32 = arith.addf %30, %31 : vector<1x8xf32>
    %33 = math.tanh %32 : vector<1x8xf32>
    %cst_24 = arith.constant 1.000000e+00 : f32
    %34 = vector.broadcast %cst_24 : f32 to vector<1x8xf32>
    %35 = arith.addf %33, %34 : vector<1x8xf32>
    %cst_25 = arith.constant 3.500000e+00 : f32
    %36 = vector.broadcast %cst_25 : f32 to vector<1x8xf32>
    %37 = arith.mulf %36, %35 : vector<1x8xf32>
    %cst_26 = arith.constant -5.000000e+00 : f32
    %38 = vector.broadcast %cst_26 : f32 to vector<1x8xf32>
    %39 = arith.addf %38, %37 : vector<1x8xf32>
    %c4_i32_27 = arith.constant 4 : i32
    %40 = vector.broadcast %c4_i32_27 : i32 to vector<1x8xi32>
    %41 = arith.cmpi sge, %7, %40 : vector<1x8xi32>
    %42 = arith.select %41, %39, %32 : vector<1x8xi1>, vector<1x8xf32>
    %43 = arith.index_cast %8 : i32 to index
    %c0_28 = arith.constant 0 : index
    %44 = vector.load %arg8[%43, %c0_28] : memref<8x8xf32, #tpu.memory_space<vmem>>, vector<1x8xf32>
    tpu.vector_store %arg8[%43, %c0_28], %42 {strides = array<i32>} : memref<8x8xf32, #tpu.memory_space<vmem>>, vector<1x8xf32>,
    %c1 = arith.constant 1 : index
    %45 = memref.load %arg0[%c1] : memref<3xi32, #tpu.memory_space<smem>>
    %46 = arith.index_cast %45 : i32 to index
    %c0_29 = arith.constant 0 : index
    %47 = vector.load %arg1[%46, %c0_29] : memref<8x16xf32, #tpu.memory_space<vmem>>, vector<1x16xf32>
    %48 = arith.truncf %47 : vector<1x16xf32> to vector<1x16xbf16>
    %c1_30 = arith.constant 1 : index
    %c0_31 = arith.constant 0 : index
    %c0_32 = arith.constant 0 : index
    %49 = vector.load %arg2[%c1_30, %c0_31, %c0_32] : memref<3x16x256xbf16, #tpu.memory_space<vmem>>, vector<1x16x256xbf16>
    %50 = vector.shape_cast %49 : vector<1x16x256xbf16> to vector<16x256xbf16>
    %cst_33 = arith.constant dense<0.000000e+00> : vector<1x256xf32>
    %51 = tpu.matmul %48, %50, %cst_33 {dimension_numbers = #tpu.dot_dimension_numbers<[1], [0], [0], [1], [0, 0, 1, 1], [], []>} : vector<1x16xbf16>, vector<16x256xbf16>, vector<1x256xf32> -> vector<1x256xf32>
    %c1_34 = arith.constant 1 : index
    %c0_35 = arith.constant 0 : index
    %52 = vector.load %arg3[%c1_34, %c0_35] : memref<3x256xf32, #tpu.memory_space<vmem>>, vector<1x256xf32>
    %53 = arith.addf %51, %52 : vector<1x256xf32>
    %cst_36 = arith.constant 0.000000e+00 : f32
    %54 = vector.broadcast %cst_36 : f32 to vector<1x256xf32>
    %55 = arith.maximumf %53, %54 : vector<1x256xf32>
    %56 = arith.truncf %55 : vector<1x256xf32> to vector<1x256xbf16>
    %c1_37 = arith.constant 1 : index
    %c0_38 = arith.constant 0 : index
    %c0_39 = arith.constant 0 : index
    %57 = vector.load %arg4[%c1_37, %c0_38, %c0_39] : memref<3x256x256xbf16, #tpu.memory_space<vmem>>, vector<1x256x256xbf16>
    %58 = vector.shape_cast %57 : vector<1x256x256xbf16> to vector<256x256xbf16>
    %cst_40 = arith.constant dense<0.000000e+00> : vector<1x256xf32>
    %59 = tpu.matmul %56, %58, %cst_40 {dimension_numbers = #tpu.dot_dimension_numbers<[1], [0], [0], [1], [0, 0, 1, 1], [], []>} : vector<1x256xbf16>, vector<256x256xbf16>, vector<1x256xf32> -> vector<1x256xf32>
    %c1_41 = arith.constant 1 : index
    %c0_42 = arith.constant 0 : index
    %60 = vector.load %arg5[%c1_41, %c0_42] : memref<3x256xf32, #tpu.memory_space<vmem>>, vector<1x256xf32>
    %61 = arith.addf %59, %60 : vector<1x256xf32>
    %cst_43 = arith.constant 0.000000e+00 : f32
    %62 = vector.broadcast %cst_43 : f32 to vector<1x256xf32>
    %63 = arith.maximumf %61, %62 : vector<1x256xf32>
    %64 = arith.truncf %63 : vector<1x256xf32> to vector<1x256xbf16>
    %c1_44 = arith.constant 1 : index
    %c0_45 = arith.constant 0 : index
    %c0_46 = arith.constant 0 : index
    %65 = vector.load %arg6[%c1_44, %c0_45, %c0_46] : memref<3x256x8xbf16, #tpu.memory_space<vmem>>, vector<1x256x8xbf16>
    %66 = vector.shape_cast %65 : vector<1x256x8xbf16> to vector<256x8xbf16>
    %cst_47 = arith.constant dense<0.000000e+00> : vector<1x8xf32>
    %67 = tpu.matmul %64, %66, %cst_47 {dimension_numbers = #tpu.dot_dimension_numbers<[1], [0], [0], [1], [0, 0, 1, 1], [], []>} : vector<1x256xbf16>, vector<256x8xbf16>, vector<1x8xf32> -> vector<1x8xf32>
    %c1_48 = arith.constant 1 : index
    %c0_49 = arith.constant 0 : index
    %68 = vector.load %arg7[%c1_48, %c0_49] : memref<3x8xf32, #tpu.memory_space<vmem>>, vector<1x8xf32>
    %69 = arith.addf %67, %68 : vector<1x8xf32>
    %70 = math.tanh %69 : vector<1x8xf32>
    %cst_50 = arith.constant 1.000000e+00 : f32
    %71 = vector.broadcast %cst_50 : f32 to vector<1x8xf32>
    %72 = arith.addf %70, %71 : vector<1x8xf32>
    %cst_51 = arith.constant 3.500000e+00 : f32
    %73 = vector.broadcast %cst_51 : f32 to vector<1x8xf32>
    %74 = arith.mulf %73, %72 : vector<1x8xf32>
    %cst_52 = arith.constant -5.000000e+00 : f32
    %75 = vector.broadcast %cst_52 : f32 to vector<1x8xf32>
    %76 = arith.addf %75, %74 : vector<1x8xf32>
    %c4_i32_53 = arith.constant 4 : i32
    %77 = vector.broadcast %c4_i32_53 : i32 to vector<1x8xi32>
    %78 = arith.cmpi sge, %7, %77 : vector<1x8xi32>
    %79 = arith.select %78, %76, %69 : vector<1x8xi1>, vector<1x8xf32>
    %80 = arith.index_cast %45 : i32 to index
    %c0_54 = arith.constant 0 : index
    %81 = vector.load %arg8[%80, %c0_54] : memref<8x8xf32, #tpu.memory_space<vmem>>, vector<1x8xf32>
    tpu.vector_store %arg8[%80, %c0_54], %79 {strides = array<i32>} : memref<8x8xf32, #tpu.memory_space<vmem>>, vector<1x8xf32>,
    %c2 = arith.constant 2 : index
    %82 = memref.load %arg0[%c2] : memref<3xi32, #tpu.memory_space<smem>>
    %83 = arith.index_cast %82 : i32 to index
    %c0_55 = arith.constant 0 : index
    %84 = vector.load %arg1[%83, %c0_55] : memref<8x16xf32, #tpu.memory_space<vmem>>, vector<1x16xf32>
    %85 = arith.truncf %84 : vector<1x16xf32> to vector<1x16xbf16>
    %c2_56 = arith.constant 2 : index
    %c0_57 = arith.constant 0 : index
    %c0_58 = arith.constant 0 : index
    %86 = vector.load %arg2[%c2_56, %c0_57, %c0_58] : memref<3x16x256xbf16, #tpu.memory_space<vmem>>, vector<1x16x256xbf16>
    %87 = vector.shape_cast %86 : vector<1x16x256xbf16> to vector<16x256xbf16>
    %cst_59 = arith.constant dense<0.000000e+00> : vector<1x256xf32>
    %88 = tpu.matmul %85, %87, %cst_59 {dimension_numbers = #tpu.dot_dimension_numbers<[1], [0], [0], [1], [0, 0, 1, 1], [], []>} : vector<1x16xbf16>, vector<16x256xbf16>, vector<1x256xf32> -> vector<1x256xf32>
    %c2_60 = arith.constant 2 : index
    %c0_61 = arith.constant 0 : index
    %89 = vector.load %arg3[%c2_60, %c0_61] : memref<3x256xf32, #tpu.memory_space<vmem>>, vector<1x256xf32>
    %90 = arith.addf %88, %89 : vector<1x256xf32>
    %cst_62 = arith.constant 0.000000e+00 : f32
    %91 = vector.broadcast %cst_62 : f32 to vector<1x256xf32>
    %92 = arith.maximumf %90, %91 : vector<1x256xf32>
    %93 = arith.truncf %92 : vector<1x256xf32> to vector<1x256xbf16>
    %c2_63 = arith.constant 2 : index
    %c0_64 = arith.constant 0 : index
    %c0_65 = arith.constant 0 : index
    %94 = vector.load %arg4[%c2_63, %c0_64, %c0_65] : memref<3x256x256xbf16, #tpu.memory_space<vmem>>, vector<1x256x256xbf16>
    %95 = vector.shape_cast %94 : vector<1x256x256xbf16> to vector<256x256xbf16>
    %cst_66 = arith.constant dense<0.000000e+00> : vector<1x256xf32>
    %96 = tpu.matmul %93, %95, %cst_66 {dimension_numbers = #tpu.dot_dimension_numbers<[1], [0], [0], [1], [0, 0, 1, 1], [], []>} : vector<1x256xbf16>, vector<256x256xbf16>, vector<1x256xf32> -> vector<1x256xf32>
    %c2_67 = arith.constant 2 : index
    %c0_68 = arith.constant 0 : index
    %97 = vector.load %arg5[%c2_67, %c0_68] : memref<3x256xf32, #tpu.memory_space<vmem>>, vector<1x256xf32>
    %98 = arith.addf %96, %97 : vector<1x256xf32>
    %cst_69 = arith.constant 0.000000e+00 : f32
    %99 = vector.broadcast %cst_69 : f32 to vector<1x256xf32>
    %100 = arith.maximumf %98, %99 : vector<1x256xf32>
    %101 = arith.truncf %100 : vector<1x256xf32> to vector<1x256xbf16>
    %c2_70 = arith.constant 2 : index
    %c0_71 = arith.constant 0 : index
    %c0_72 = arith.constant 0 : index
    %102 = vector.load %arg6[%c2_70, %c0_71, %c0_72] : memref<3x256x8xbf16, #tpu.memory_space<vmem>>, vector<1x256x8xbf16>
    %103 = vector.shape_cast %102 : vector<1x256x8xbf16> to vector<256x8xbf16>
    %cst_73 = arith.constant dense<0.000000e+00> : vector<1x8xf32>
    %104 = tpu.matmul %101, %103, %cst_73 {dimension_numbers = #tpu.dot_dimension_numbers<[1], [0], [0], [1], [0, 0, 1, 1], [], []>} : vector<1x256xbf16>, vector<256x8xbf16>, vector<1x8xf32> -> vector<1x8xf32>
    %c2_74 = arith.constant 2 : index
    %c0_75 = arith.constant 0 : index
    %105 = vector.load %arg7[%c2_74, %c0_75] : memref<3x8xf32, #tpu.memory_space<vmem>>, vector<1x8xf32>
    %106 = arith.addf %104, %105 : vector<1x8xf32>
    %107 = math.tanh %106 : vector<1x8xf32>
    %cst_76 = arith.constant 1.000000e+00 : f32
    %108 = vector.broadcast %cst_76 : f32 to vector<1x8xf32>
    %109 = arith.addf %107, %108 : vector<1x8xf32>
    %cst_77 = arith.constant 3.500000e+00 : f32
    %110 = vector.broadcast %cst_77 : f32 to vector<1x8xf32>
    %111 = arith.mulf %110, %109 : vector<1x8xf32>
    %cst_78 = arith.constant -5.000000e+00 : f32
    %112 = vector.broadcast %cst_78 : f32 to vector<1x8xf32>
    %113 = arith.addf %112, %111 : vector<1x8xf32>
    %c4_i32_79 = arith.constant 4 : i32
    %114 = vector.broadcast %c4_i32_79 : i32 to vector<1x8xi32>
    %115 = arith.cmpi sge, %7, %114 : vector<1x8xi32>
    %116 = arith.select %115, %113, %106 : vector<1x8xi1>, vector<1x8xf32>
    %117 = arith.index_cast %82 : i32 to index
    %c0_80 = arith.constant 0 : index
    %118 = vector.load %arg8[%117, %c0_80] : memref<8x8xf32, #tpu.memory_space<vmem>>, vector<1x8xf32>
    tpu.vector_store %arg8[%117, %c0_80], %116 {strides = array<i32>} : memref<8x8xf32, #tpu.memory_space<vmem>>, vector<1x8xf32>,
    return
  }
}

</mosaic_0001>

<bundles_post_ra>
// kernel: tpu_custom_call.1
= control target key start
LH: loop header
LB: loop body
LE: loop exit
PB: predicated region body
PF: predicated region fallthrough
CT: control target
= control target key end

     0   :  { %13 = vsyncpa [#allocation5], 0  ;;  %s2504_s0 = inlined_call_operand.vmem [shape: s32[3], index: 0, kind: input, shape index: {}]   ;;  %s2505_s1 = inlined_call_operand.vmem [shape: f32[8,16], index: 1, kind: input, shape index: {}]   ;;  %s2506_s2 = inlined_call_operand.vmem [shape: bf16[3,16,256], index: 2, kind: input, shape index: {}]   ;;  %s2507_s3 = inlined_call_operand.vmem [shape: f32[3,256], index: 3, kind: input, shape index: {}]   ;;  %s2508_s4 = inlined_call_operand.hbm [shape: bf16[3,256,256], index: 4, kind: input, shape index: {}]   ;;  %s2509_s5 = inlined_call_operand.vmem [shape: f32[3,256], index: 5, kind: input, shape index: {}]   ;;  %s2510_s6 = inlined_call_operand.vmem [shape: bf16[3,256,8], index: 6, kind: input, shape index: {}]   ;;  %s2511_s7 = inlined_call_operand.vmem [shape: f32[3,8], index: 7, kind: input, shape index: {}]   ;;  %s2512_s8 = inlined_call_operand.hbm [shape: f32[8,8], index: 8, kind: output, shape index: {}]  }
   0x1   :  { %14 = vsyncpa [#allocation3], 0 }
   0x2   :  { %15 = vsyncpa [#allocation4], 0  ;;  %s22_s29 = sshll.u32 %s2504_s0, 4  ;;  %s23_s29 = int_to_ptr.vmem [resolvable:$true] %s22_s29 }
   0x3   :  { %s2108_s30 = scalar_lea.vmem %s23_s29, 16  ;;  %p2113_p1 = scmp.lt.s32.totalorder %s23_s29, %s23_s29 }
   0x4   :  { %p2109_p0 = scmp.ne.s32.totalorder %s23_s29, %s2108_s30  ;;  %p2114_p2 = scmp.lt.s32.totalorder %s2108_s30, %s2108_s30 }
   0x6   :  { %p2115_p3 = por %p2114_p2, %p2113_p1 }
   0x8   :  { %p2116_p4 = pnand %p2115_p3, %p2109_p0 }
   0xa   :  { %2119 = shalt.err (!%p2116_p4)
}
   0xb   :  { %s2170_s9 = smov [#allocation2]   ;;  %s2171_s10 = smov [#allocation6]  }
   0xc   :  { %25 = dma.vmem_to_smem %s23_s29, 16, %s2170_s9, [#allocation5]  }
   0xd   :  { %s37_s11 = sshll.u32 %s2171_s10, 4  ;;  %s2120_s14 = scalar_lea.hbm %s2508_s4, 12288  ;;  %s38_s11 = int_to_ptr.vmem [resolvable:$true] %s37_s11 }
   0xe   :  { %p2121_p5 = scmp.ne.s32.totalorder %s2508_s4, %s2120_s14  ;;  %p2124_p6 = scmp.lt.u32.totalorder %s2120_s14, %s2508_s4 }
  0x10   :  { %p2126_p7 = pnand %p2124_p6, %p2121_p5 }
  0x12   :  { %2129 = shalt.err (!%p2126_p7)
}
  0x13   :  { %s2130_s18 = scalar_lea.vmem %s38_s11, 12288  ;;  %p2135_p9 = scmp.lt.s32.totalorder %s38_s11, %s38_s11 }
  0x14   :  { %p2131_p8 = scmp.ne.s32.totalorder %s38_s11, %s2130_s18  ;;  %p2136_p10 = scmp.lt.s32.totalorder %s2130_s18, %s2130_s18 }
  0x16   :  { %p2137_p11 = por %p2136_p10, %p2135_p9 }
  0x18   :  { %p2138_p12 = pnand %p2137_p11, %p2131_p8 }
  0x1a   :  { %2141 = shalt.err (!%p2138_p12)
}
  0x1b   :  { %s2172_s19 = smov 128   ;;  %s2173_s20 = smov 8  }
  0x1c   :  { %43 = dma.hbm_to_vmem [thread:$0]  %s2508_s4, 12288, %s38_s11, [#allocation3], %s2172_s19, %s2172_s19, %s2173_s20  }
  0x1d   :  { %2164 = dma.done.wait [#allocation5], 16  }
  0x1e   :  { %2165 = vsyncadd [#allocation5], 4294967280 }
  0x1f   :  { %2166 = dma.done.wait [#allocation3], 12288  }
  0x20   :  { %2167 = vsyncadd [#allocation3], 4294955008 }
  0x21   :  { %56 = sfence }
  0x22   :  { %v1901_v0 = vld [vmem:[%s2506_s2 + $0x4] ss:$8 sps:$4 sm:$0xff]   ;;  %v1903_v1 = vld [vmem:[%s2506_s2] ss:$8 sps:$4 sm:$0xff]   ;;  %v2174_v2 = vmov 0   ;;  %s2244_s27 = sld [smem:[#allocation2]]  ;;  %v58_v49 = vlaneseq }
  0x23   :  { %128 = vmatprep.mubr.bf16.mxu0 %v2174_v2  ;;  %96 = vmatprep.subr.bf16.mxu0 %v1901_v0  ;;  %v1904_v3 = vld [vmem:[#allocation6 + $0x4] ss:$8 sps:$4 sm:$0xff]   ;;  %v1906_v4 = vld [vmem:[#allocation6] ss:$8 sps:$4 sm:$0xff]   ;;  %v1907_v5 = vld [vmem:[#allocation6 + $0x14] ss:$8 sps:$4 sm:$0xff]  }
  0x24   :  { %97 = vmatpush1.bf16.msra.mxu0 %v1903_v1  ;;  %345 = vmatprep.subr.bf16.mxu1 %v1904_v3  ;;  %v1909_v6 = vld [vmem:[#allocation6 + $0x10] ss:$8 sps:$4 sm:$0xff]   ;;  %v1910_v7 = vld [vmem:[#allocation6 + $0x24] ss:$8 sps:$4 sm:$0xff]   ;;  %vm92_vm0 = vcmask 130048   ;;  %v83_v50 = vshrl.u32 %v58_v49, 7 }
  0x25   :  { %346 = vmatpush1.bf16.msra.mxu1 %v1906_v4  ;;  %v1912_v10 = vld [vmem:[#allocation6 + $0x20] ss:$8 sps:$4 sm:$0xff]   ;;  %v1913_v11 = vld [vmem:[#allocation6 + $0x34] ss:$8 sps:$4 sm:$0xff]   ;;  %v1915_v12 = vld [vmem:[#allocation6 + $0x30] ss:$8 sps:$4 sm:$0xff]  }
  0x26   :  { %347 = vmatprep.subr.bf16.mxu1 %v1907_v5  ;;  %v1916_v13 = vld [vmem:[#allocation6 + $0x44] ss:$8 sps:$4 sm:$0xff]   ;;  %v1918_v14 = vld [vmem:[#allocation6 + $0x40] ss:$8 sps:$4 sm:$0xff]   ;;  %v1919_v15 = vld [vmem:[#allocation6 + $0x54] ss:$8 sps:$4 sm:$0xff]  }
  0x27   :  { %v1921_v16 = vld [vmem:[#allocation6 + $0x50] ss:$8 sps:$4 sm:$0xff]   ;;  %v1922_v17 = vld [vmem:[#allocation6 + $0x64] ss:$8 sps:$4 sm:$0xff]   ;;  %v1924_v18 = vld [vmem:[#allocation6 + $0x60] ss:$8 sps:$4 sm:$0xff]  }
  0x28   :  { %s65_s29 = scalar_lea.vmem %s2505_s1, %s2244_s27  ;;  %v1925_v19 = vld [vmem:[#allocation6 + $0x74] ss:$8 sps:$4 sm:$0xff]   ;;  %v1927_v20 = vld [vmem:[#allocation6 + $0x70] ss:$8 sps:$4 sm:$0xff]   ;;  %v1928_v21 = vld [vmem:[#allocation6 + $0x84] ss:$8 sps:$4 sm:$0xff]  }
  0x29   :  { %v66_v8 = vld [vmem:[%s65_s29] sm:$0x1]  ;;  %348 = vmatpush1.bf16.msra.mxu1 %v1909_v6  ;;  %v1931_v23 = vld [vmem:[#allocation6 + $0x94] ss:$8 sps:$4 sm:$0xff]   ;;  %v1933_v24 = vld [vmem:[#allocation6 + $0x90] ss:$8 sps:$4 sm:$0xff]  }
  0x2a   :  { %v67_v9 = vpack.c.bf16 %v66_v8, %v66_v8  ;;  %349 = vmatprep.subr.bf16.mxu1 %v1910_v7  ;;  %v1930_v22 = vld [vmem:[#allocation6 + $0x80] ss:$8 sps:$4 sm:$0xff]   ;;  %v1934_v25 = vld [vmem:[#allocation6 + $0xa4] ss:$8 sps:$4 sm:$0xff]   ;;  %v1937_v27 = vld [vmem:[#allocation6 + $0xb4] ss:$8 sps:$4 sm:$0xff]  }
  0x2b   :  { %v1936_v26 = vld [vmem:[#allocation6 + $0xa0] ss:$8 sps:$4 sm:$0xff]   ;;  %v1939_v28 = vld [vmem:[#allocation6 + $0xb0] ss:$8 sps:$4 sm:$0xff]   ;;  %v1940_v29 = vld [vmem:[#allocation6 + $0xc4] ss:$8 sps:$4 sm:$0xff]  }
  0x2c   :  { %1603 = vmatmul.mubr.msk.bf16.vlgmr.msra.gmra.mrb[0].mxu0 %vm92_vm0, %v67_v9  ;;  %v1942_v30 = vld [vmem:[#allocation6 + $0xc0] ss:$8 sps:$4 sm:$0xff]   ;;  %v1943_v31 = vld [vmem:[#allocation6 + $0xd4] ss:$8 sps:$4 sm:$0xff]   ;;  %v1945_v32 = vld [vmem:[#allocation6 + $0xd0] ss:$8 sps:$4 sm:$0xff]  }
  0x2d   :  { %350 = vmatpush1.bf16.msra.mxu1 %v1912_v10  ;;  %v1946_v33 = vld [vmem:[#allocation6 + $0xe4] ss:$8 sps:$4 sm:$0xff]   ;;  %v1948_v34 = vld [vmem:[#allocation6 + $0xe0] ss:$8 sps:$4 sm:$0xff]   ;;  %v1949_v35 = vld [vmem:[#allocation6 + $0xf4] ss:$8 sps:$4 sm:$0xff]  }
  0x2e   :  { %351 = vmatprep.subr.bf16.mxu1 %v1913_v11  ;;  %v1951_v36 = vld [vmem:[#allocation6 + $0xf0] ss:$8 sps:$4 sm:$0xff]   ;;  %v1952_v37 = vld [vmem:[%s2510_s6 + $0x40] sm:$0xff]   ;;  %v1954_v39 = vld [vmem:[%s2510_s6 + $0x48] sm:$0xff]   ;;  %v2288_v51 = vsub.s32 0, %v83_v50  ;;  %v2293_v53 = vsub.s32 1, %v83_v50 }
  0x2f   :  { %v1953_v38 = vld [vmem:[%s2510_s6] sm:$0xff]   ;;  %1828 = vmatprep.subr.bf16.mxu0 %v1952_v37  ;;  %v1955_v40 = vld [vmem:[%s2510_s6 + $0x8] sm:$0xff]   ;;  %v1956_v41 = vld [vmem:[%s2510_s6 + $0x50] sm:$0xff]   ;;  %s2317_s22 = sld [smem:[#allocation2 + $0x1]]  ;;  %vm62_vm2 = vcmask 64512   ;;  %s2381_s14 = sld [smem:[#allocation2 + $0x2]] }
  0x30   :  { %1829 = vmatpush3.bf16.msra.mxu0 %v1953_v38  ;;  %v1957_v42 = vld [vmem:[%s2510_s6 + $0x10] sm:$0xff]   ;;  %v1958_v43 = vld [vmem:[%s2510_s6 + $0x58] sm:$0xff]   ;;  %v1960_v45 = vld [vmem:[%s2510_s6 + $0x60] sm:$0xff]   ;;  %vm565_vm3 = vcmask 57344  }
  0x31   :  { %352 = vmatpush1.bf16.msra.mxu1 %v1915_v12  ;;  %1830 = vmatprep.subr.bf16.mxu0 %v1954_v39  ;;  %v1959_v44 = vld [vmem:[%s2510_s6 + $0x18] sm:$0xff]   ;;  %v1961_v46 = vld [vmem:[%s2510_s6 + $0x20] sm:$0xff]   ;;  %v1962_v47 = vld [vmem:[%s2510_s6 + $0x68] sm:$0xff]  }
  0x32   :  { %353 = vmatprep.subr.bf16.mxu1 %v1916_v13  ;;  %v1963_v48 = vld [vmem:[%s2510_s6 + $0x28] sm:$0xff]   ;;  %v70_v52 = vld [vmem:[%s2507_s3] ss:$4 sm:$0x3]  ;;  %v1964_v3 = vld [vmem:[%s2510_s6 + $0x70] sm:$0xff]  }
  0x33   :  { %v85_v54 = vrot.slane %v70_v52, %v2288_v51  ;;  %v89_v55 = vrot.slane %v70_v52, %v2293_v53  ;;  %v1965_v4 = vld [vmem:[%s2510_s6 + $0x30] sm:$0xff]   ;;  %v1966_v5 = vld [vmem:[%s2510_s6 + $0x78] sm:$0xff]   ;;  %v173_v8 = vld [vmem:[%s2509_s5] ss:$4 sm:$0x3] }
  0x34   :  { %1831 = vmatpush3.bf16.msra.mxu0 %v1955_v40  ;;  %v1967_v6 = vld [vmem:[%s2510_s6 + $0x38] sm:$0xff]   ;;  %v338_v9 = vrot.slane %v173_v8, %v2288_v51  ;;  %v342_v10 = vrot.slane %v173_v8, %v2293_v53  ;;  %v1989_v37 = vld [vmem:[#allocation6 + $0x160] ss:$8 sps:$4 sm:$0xff]   ;;  %v1997_v40 = vld [vmem:[#allocation6 + $0x184] ss:$8 sps:$4 sm:$0xff]  }
  0x35   :  { %354 = vmatpush1.bf16.msra.mxu1 %v1918_v14  ;;  %1832 = vmatprep.subr.bf16.mxu0 %v1956_v41  ;;  %v1970_v7 = vld [vmem:[%s2506_s2 + $0x14] ss:$8 sps:$4 sm:$0xff]   ;;  %s568_s4 = scalar_lea.vmem %s2505_s1, %s2317_s22  ;;  %v1992_v39 = vld [vmem:[#allocation6 + $0x170] ss:$8 sps:$4 sm:$0xff]   ;;  %v1995_v41 = vld [vmem:[#allocation6 + $0x180] ss:$8 sps:$4 sm:$0xff]   ;;  %s1074_s18 = scalar_lea.vmem %s2505_s1, %s2381_s14 }
  0x36   :  { %355 = vmatprep.subr.bf16.mxu1 %v1919_v15  ;;  %v1994_v38 = vld [vmem:[#allocation6 + $0x174] ss:$8 sps:$4 sm:$0xff]   ;;  %v2007_v50 = vld [vmem:[#allocation6 + $0x1c0] ss:$8 sps:$4 sm:$0xff]   ;;  %s1577_s1 = scalar_lea.vmem [#allocation7], %s2381_s14 }
  0x37   :  { %v2012_v52 = vld [vmem:[#allocation6 + $0x1d4] ss:$8 sps:$4 sm:$0xff]   ;;  %v2031_v8 = vld [vmem:[%s2510_s6 + $0xa0] sm:$0xff]  }
  0x38   :  { %1833 = vmatpush3.bf16.msra.mxu0 %v1957_v42  ;;  %v2000_v42 = vld [vmem:[#allocation6 + $0x194] ss:$8 sps:$4 sm:$0xff]  }
  0x39   :  { %356 = vmatpush1.bf16.msra.mxu1 %v1921_v16  ;;  %1834 = vmatprep.subr.bf16.mxu0 %v1958_v43  ;;  %v1998_v43 = vld [vmem:[#allocation6 + $0x190] ss:$8 sps:$4 sm:$0xff]  }
  0x3a   :  { %357 = vmatprep.subr.bf16.mxu1 %v1922_v17 }
  0x3c   :  { %1835 = vmatpush3.bf16.msra.mxu0 %v1959_v44  ;;  %v2003_v44 = vld [vmem:[#allocation6 + $0x1a4] ss:$8 sps:$4 sm:$0xff]  }
  0x3d   :  { %358 = vmatpush1.bf16.msra.mxu1 %v1924_v18  ;;  %1836 = vmatprep.subr.bf16.mxu0 %v1960_v45  ;;  %v2001_v45 = vld [vmem:[#allocation6 + $0x1a0] ss:$8 sps:$4 sm:$0xff]  }
  0x3e   :  { %359 = vmatprep.subr.bf16.mxu1 %v1925_v19 }
  0x40   :  { %1837 = vmatpush3.bf16.msra.mxu0 %v1961_v46  ;;  %v2006_v46 = vld [vmem:[#allocation6 + $0x1b4] ss:$8 sps:$4 sm:$0xff]  }
  0x41   :  { %360 = vmatpush1.bf16.msra.mxu1 %v1927_v20  ;;  %1838 = vmatprep.subr.bf16.mxu0 %v1962_v47  ;;  %v1968_v20 = vld [vmem:[%s2506_s2 + $0x10] ss:$8 sps:$4 sm:$0xff]  }
  0x42   :  { %361 = vmatprep.subr.bf16.mxu1 %v1928_v21  ;;  %v2004_v47 = vld [vmem:[#allocation6 + $0x1b0] ss:$8 sps:$4 sm:$0xff]  }
  0x44   :  { %1839 = vmatpush3.bf16.msra.mxu0 %v1963_v48  ;;  %v2009_v48 = vld [vmem:[#allocation6 + $0x1c4] ss:$8 sps:$4 sm:$0xff]  }
  0x45   :  { %362 = vmatpush1.bf16.msra.mxu1 %v1930_v22  ;;  %1840 = vmatprep.subr.bf16.mxu0 %v1964_v3  ;;  %v1973_v22 = vld [vmem:[#allocation6 + $0x104] ss:$8 sps:$4 sm:$0xff]   ;;  %v2026_v3 = vld [vmem:[%s2510_s6 + $0xd0] sm:$0xff]  }
  0x46   :  { %363 = vmatprep.subr.bf16.mxu1 %v1931_v23  ;;  %v569_v23 = vld [vmem:[%s568_s4] sm:$0x1] }
  0x48   :  { %1841 = vmatpush3.bf16.msra.mxu0 %v1965_v4  ;;  %v2027_v4 = vld [vmem:[%s2510_s6 + $0x90] sm:$0xff]  }
  0x49   :  { %364 = vmatpush1.bf16.msra.mxu1 %v1933_v24  ;;  %1842 = vmatprep.subr.bf16.mxu0 %v1966_v5  ;;  %v570_v24 = vpack.c.bf16 %v569_v23, %v569_v23  ;;  %v2028_v5 = vld [vmem:[%s2510_s6 + $0xd8] sm:$0xff]  }
  0x4a   :  { %365 = vmatprep.subr.bf16.mxu1 %v1934_v25  ;;  %v1971_v25 = vld [vmem:[#allocation6 + $0x100] ss:$8 sps:$4 sm:$0xff]  }
  0x4c   :  { %1843 = vmatpush3.bf16.msra.mxu0 %v1967_v6  ;;  %v2029_v6 = vld [vmem:[%s2510_s6 + $0x98] sm:$0xff]  }
  0x4d   :  { %366 = vmatpush1.bf16.msra.mxu1 %v1936_v26  ;;  %600 = vmatprep.subr.bf16.mxu0 %v1970_v7  ;;  %v1976_v26 = vld [vmem:[#allocation6 + $0x114] ss:$8 sps:$4 sm:$0xff]   ;;  %v2030_v7 = vld [vmem:[%s2510_s6 + $0xe0] sm:$0xff]  }
  0x4e   :  { %367 = vmatprep.subr.bf16.mxu1 %v1937_v27  ;;  %v1974_v27 = vld [vmem:[#allocation6 + $0x110] ss:$8 sps:$4 sm:$0xff]  }
  0x51   :  { %368 = vmatpush1.bf16.msra.mxu1 %v1939_v28  ;;  %v1979_v28 = vld [vmem:[#allocation6 + $0x124] ss:$8 sps:$4 sm:$0xff]  }
  0x52   :  { %369 = vmatprep.subr.bf16.mxu1 %v1940_v29  ;;  %v1977_v29 = vld [vmem:[#allocation6 + $0x120] ss:$8 sps:$4 sm:$0xff]  }
  0x55   :  { %370 = vmatpush1.bf16.msra.mxu1 %v1942_v30  ;;  %v1982_v30 = vld [vmem:[#allocation6 + $0x134] ss:$8 sps:$4 sm:$0xff]  }
  0x56   :  { %371 = vmatprep.subr.bf16.mxu1 %v1943_v31  ;;  %v1980_v31 = vld [vmem:[#allocation6 + $0x130] ss:$8 sps:$4 sm:$0xff]  }
  0x59   :  { %372 = vmatpush1.bf16.msra.mxu1 %v1945_v32  ;;  %v1985_v32 = vld [vmem:[#allocation6 + $0x144] ss:$8 sps:$4 sm:$0xff]  }
  0x5a   :  { %373 = vmatprep.subr.bf16.mxu1 %v1946_v33  ;;  %v1983_v33 = vld [vmem:[#allocation6 + $0x140] ss:$8 sps:$4 sm:$0xff]  }
  0x5d   :  { %374 = vmatpush1.bf16.msra.mxu1 %v1948_v34  ;;  %v1988_v34 = vld [vmem:[#allocation6 + $0x154] ss:$8 sps:$4 sm:$0xff]  }
  0x5e   :  { %375 = vmatprep.subr.bf16.mxu1 %v1949_v35  ;;  %v1986_v35 = vld [vmem:[#allocation6 + $0x150] ss:$8 sps:$4 sm:$0xff]  }
  0x61   :  { %376 = vmatpush1.bf16.msra.mxu1 %v1951_v36  ;;  %v1991_v36 = vld [vmem:[#allocation6 + $0x164] ss:$8 sps:$4 sm:$0xff]  }
  0xff   :  { %v130_v56 = vpop.f32.mrb[0].mxu0 }
 0x100   :  { %v131_v57 = vadd.f32 %v130_v56, %v85_v54  ;;  %v132_v58 = vpop.f32.mrb[1].mxu0  ;;  %v2010_v54 = vld [vmem:[#allocation6 + $0x1d0] ss:$8 sps:$4 sm:$0xff]   ;;  %v2013_v56 = vld [vmem:[#allocation6 + $0x1e0] ss:$8 sps:$4 sm:$0xff]  }
 0x101   :  { %v133_v59 = vadd.f32 %v132_v58, %v89_v55  ;;  %v134_v60 = vpop.f32.mrb[2].mxu0  ;;  %v2015_v55 = vld [vmem:[#allocation6 + $0x1e4] ss:$8 sps:$4 sm:$0xff]   ;;  %v2016_v58 = vld [vmem:[#allocation6 + $0x1f0] ss:$8 sps:$4 sm:$0xff]  }
 0x102   :  { %v137_v61 = vmax.f32 %v131_v57, 0.0  ;;  %v135_v62 = vpop.f32.mrb[3].mxu0  ;;  %v2018_v57 = vld [vmem:[#allocation6 + $0x1f4] ss:$8 sps:$4 sm:$0xff]   ;;  %v2021_v60 = vld [vmem:[%s2506_s2 + $0x24] ss:$8 sps:$4 sm:$0xff]  }
 0x103   :  { %v138_v63 = vmax.f32 %v133_v59, 0.0  ;;  %v2329_v59 = vand.u32 127, %v58_v49  ;;  %v2023_v49 = vld [vmem:[%s2510_s6 + $0x80] sm:$0xff]  }
 0x104   :  { %v139_v1 = vpack.c.bf16 %v137_v61, %v137_v61  ;;  %v2175_v61 = vmov 0.0  }
 0x105   :  { %v140_v0 = vpack.c.bf16 %v138_v63, %v138_v63  ;;  %vm60_vm1 = vcmp.ge.s32.totalorder %v2329_v59, 4  ;;  %v2022_v63 = vld [vmem:[%s2510_s6 + $0xc0] sm:$0xff]  }
 0x106   :  { %v61_v62 = vsel %vm60_vm1, -1.5, %v2175_v61  ;;  %1850 = vmatprep.subr.bf16.mxu1 %v2022_v63  ;;  %v2043_v63 = vld [vmem:[#allocation6 + $0x214] ss:$8 sps:$4 sm:$0xff]  }
 0x107   :  { %377 = vmatprep.mubr.bf16.mxu1 %v140_v0  ;;  %v2024_v0 = vld [vmem:[%s2510_s6 + $0xc8] sm:$0xff]   ;;  %63 = vst.msk [vmem:[#allocation7] sm:$0xff] %vm62_vm2, %v61_v62 }
 0x108   :  { %378 = vmatmul.mubr.bf16.vlgmr.msra.gmra.mrb[0].mxu1 %v139_v1  ;;  %v2025_v1 = vld [vmem:[%s2510_s6 + $0x88] sm:$0xff]  }
 0x109   :  { %1851 = vmatpush3.bf16.msra.mxu1 %v2023_v49 }
 0x10a   :  { %1852 = vmatprep.subr.bf16.mxu1 %v2024_v0 }
 0x10d   :  { %1853 = vmatpush3.bf16.msra.mxu1 %v2025_v1  ;;  %v2041_v1 = vld [vmem:[#allocation6 + $0x210] ss:$8 sps:$4 sm:$0xff]  }
 0x10e   :  { %1854 = vmatprep.subr.bf16.mxu1 %v2026_v3 }
 0x111   :  { %1855 = vmatpush3.bf16.msra.mxu1 %v2027_v4 }
 0x112   :  { %1856 = vmatprep.subr.bf16.mxu1 %v2028_v5  ;;  %v2046_v5 = vld [vmem:[#allocation6 + $0x224] ss:$8 sps:$4 sm:$0xff]  }
 0x115   :  { %1857 = vmatpush3.bf16.msra.mxu1 %v2029_v6 }
 0x116   :  { %1858 = vmatprep.subr.bf16.mxu1 %v2030_v7 }
 0x119   :  { %1859 = vmatpush3.bf16.msra.mxu1 %v2031_v8  ;;  %v2044_v8 = vld [vmem:[#allocation6 + $0x220] ss:$8 sps:$4 sm:$0xff]  }
 0x1db   :  { %v379_v11 = vpop.f32.mrb[0].mxu1 }
 0x1dc   :  { %v380_v12 = vadd.f32 %v379_v11, %v338_v9  ;;  %v381_v13 = vpop.f32.mrb[1].mxu1  ;;  %v2032_v9 = vld [vmem:[%s2510_s6 + $0xe8] sm:$0xff]  }
 0x1dd   :  { %v382_v14 = vadd.f32 %v381_v13, %v342_v10  ;;  %v383_v15 = vpop.f32.mrb[2].mxu1  ;;  %v2033_v10 = vld [vmem:[%s2510_s6 + $0xa8] sm:$0xff]   ;;  %1860 = vmatprep.subr.bf16.mxu1 %v2032_v9 }
 0x1de   :  { %v386_v16 = vmax.f32 %v380_v12, 0.0  ;;  %v384_v17 = vpop.f32.mrb[3].mxu1  ;;  %1861 = vmatpush3.bf16.msra.mxu1 %v2033_v10  ;;  %v422_v12 = vld [vmem:[%s2511_s7] sm:$0x1]  ;;  %v2049_v10 = vld [vmem:[#allocation6 + $0x234] ss:$8 sps:$4 sm:$0xff]  }
 0x1df   :  { %v387_v18 = vmax.f32 %v382_v14, 0.0 }
 0x1e0   :  { %v388_v21 = vpack.c.bf16 %v386_v16, %v386_v16  ;;  %v1655_v16 = vld [vmem:[%s2507_s3 + $0x1] ss:$4 sm:$0x3] }
 0x1e1   :  { %v389_v19 = vpack.c.bf16 %v387_v18, %v387_v18 }
 0x1e3   :  { %551 = vmatprep.mubr.bf16.mxu0 %v389_v19  ;;  %v590_v19 = vrot.slane %v1655_v16, %v2288_v51 }
 0x1e4   :  { %552 = vmatmul.mubr.bf16.vlgmr.msra.gmra.mrb[4].mxu0 %v388_v21 }
 0x1e5   :  { %601 = vmatpush1.bf16.msra.mxu0 %v1968_v20  ;;  %632 = vmatprep.mubr.bf16.mxu0 %v2174_v2  ;;  %v594_v20 = vrot.slane %v1655_v16, %v2293_v53  ;;  %v2058_v16 = vld [vmem:[#allocation6 + $0x264] ss:$8 sps:$4 sm:$0xff]  }
 0x1e6   :  { %851 = vmatprep.subr.bf16.mxu0 %v1973_v22 }
 0x1ec   :  { %1658 = vmatmul.mubr.msk.bf16.vlgmr.msra.gmra.mrb[8].mxu0 %vm92_vm0, %v570_v24 }
 0x1ed   :  { %852 = vmatpush1.bf16.msra.mxu0 %v1971_v25 }
 0x1ee   :  { %853 = vmatprep.subr.bf16.mxu0 %v1976_v26 }
 0x1f1   :  { %854 = vmatpush1.bf16.msra.mxu0 %v1974_v27 }
 0x1f2   :  { %855 = vmatprep.subr.bf16.mxu0 %v1979_v28 }
 0x1f5   :  { %856 = vmatpush1.bf16.msra.mxu0 %v1977_v29 }
 0x1f6   :  { %857 = vmatprep.subr.bf16.mxu0 %v1982_v30  ;;  %v2019_v30 = vld [vmem:[%s2506_s2 + $0x20] ss:$8 sps:$4 sm:$0xff]   ;;  %s564_s2 = scalar_lea.vmem [#allocation7], %s2244_s27 }
 0x1f9   :  { %858 = vmatpush1.bf16.msra.mxu0 %v1980_v31 }
 0x1fa   :  { %859 = vmatprep.subr.bf16.mxu0 %v1985_v32 }
 0x1fd   :  { %860 = vmatpush1.bf16.msra.mxu0 %v1983_v33 }
 0x1fe   :  { %861 = vmatprep.subr.bf16.mxu0 %v1988_v34  ;;  %v1075_v34 = vld [vmem:[%s1074_s18] sm:$0x1] }
 0x201   :  { %862 = vmatpush1.bf16.msra.mxu0 %v1986_v35 }
 0x202   :  { %863 = vmatprep.subr.bf16.mxu0 %v1991_v36 }
 0x205   :  { %864 = vmatpush1.bf16.msra.mxu0 %v1989_v37  ;;  %v1076_v37 = vpack.c.bf16 %v1075_v34, %v1075_v34  ;;  %v2080_v34 = vld [vmem:[#allocation6 + $0x2e0] ss:$8 sps:$4 sm:$0xff]  }
 0x206   :  { %865 = vmatprep.subr.bf16.mxu0 %v1994_v38 }
 0x209   :  { %866 = vmatpush1.bf16.msra.mxu0 %v1992_v39  ;;  %v2034_v39 = vld [vmem:[%s2510_s6 + $0xf0] sm:$0xff]  }
 0x20a   :  { %867 = vmatprep.subr.bf16.mxu0 %v1997_v40  ;;  %1862 = vmatprep.subr.bf16.mxu1 %v2034_v39  ;;  %v2036_v40 = vld [vmem:[%s2510_s6 + $0xf8] sm:$0xff]  }
 0x20d   :  { %868 = vmatpush1.bf16.msra.mxu0 %v1995_v41  ;;  %v2037_v41 = vld [vmem:[%s2510_s6 + $0xb8] sm:$0xff]  }
 0x20e   :  { %869 = vmatprep.subr.bf16.mxu0 %v2000_v42  ;;  %v2040_v42 = vld [vmem:[#allocation6 + $0x204] ss:$8 sps:$4 sm:$0xff]  }
 0x211   :  { %870 = vmatpush1.bf16.msra.mxu0 %v1998_v43  ;;  %v1659_v43 = vld [vmem:[%s2509_s5 + $0x1] ss:$4 sm:$0x3] }
 0x212   :  { %871 = vmatprep.subr.bf16.mxu0 %v2003_v44  ;;  %v844_v44 = vrot.slane %v1659_v43, %v2288_v51 }
 0x215   :  { %872 = vmatpush1.bf16.msra.mxu0 %v2001_v45  ;;  %v848_v45 = vrot.slane %v1659_v43, %v2293_v53  ;;  %v2090_v43 = vld [vmem:[%s2510_s6 + $0x150] sm:$0xff]  }
 0x216   :  { %873 = vmatprep.subr.bf16.mxu0 %v2006_v46 }
 0x219   :  { %874 = vmatpush1.bf16.msra.mxu0 %v2004_v47 }
 0x21a   :  { %875 = vmatprep.subr.bf16.mxu0 %v2009_v48 }
 0x21d   :  { %876 = vmatpush1.bf16.msra.mxu0 %v2007_v50 }
 0x21e   :  { %877 = vmatprep.subr.bf16.mxu0 %v2012_v52 }
 0x221   :  { %878 = vmatpush1.bf16.msra.mxu0 %v2010_v54 }
 0x222   :  { %879 = vmatprep.subr.bf16.mxu0 %v2015_v55 }
 0x225   :  { %880 = vmatpush1.bf16.msra.mxu0 %v2013_v56  ;;  %v2416_v56 = vld [vmem:[%s2507_s3 + $0x2] ss:$4 sm:$0x3] }
 0x226   :  { %881 = vmatprep.subr.bf16.mxu0 %v2018_v57  ;;  %v1100_v61 = vrot.slane %v2416_v56, %v2293_v53 }
 0x229   :  { %882 = vmatpush1.bf16.msra.mxu0 %v2016_v58 }
 0x22a   :  { %1106 = vmatprep.subr.bf16.mxu0 %v2021_v60  ;;  %v2038_v60 = vld [vmem:[#allocation6 + $0x200] ss:$8 sps:$4 sm:$0xff]  }
 0x2b7   :  { %v1844_v11 = vpop.f32.mrb[4].mxu0 }
 0x2b8   :  { %v1845_v13 = vpop.f32.mrb[5].mxu0 }
 0x2b9   :  { %v1846_v14 = vadd.f32 %v1845_v13, %v1844_v11  ;;  %v1847_v15 = vpop.f32.mrb[6].mxu0  ;;  %v2047_v11 = vld [vmem:[#allocation6 + $0x230] ss:$8 sps:$4 sm:$0xff]   ;;  %v2050_v13 = vld [vmem:[#allocation6 + $0x240] ss:$8 sps:$4 sm:$0xff]  }
 0x2ba   :  { %v1848_v17 = vpop.f32.mrb[7].mxu0  ;;  %v2053_v15 = vld [vmem:[#allocation6 + $0x250] ss:$8 sps:$4 sm:$0xff]  }
 0x2bb   :  { %v554_v18 = vadd.f32 %v1846_v14, %v422_v12  ;;  %v2052_v12 = vld [vmem:[#allocation6 + $0x244] ss:$8 sps:$4 sm:$0xff]   ;;  %v2055_v14 = vld [vmem:[#allocation6 + $0x254] ss:$8 sps:$4 sm:$0xff]   ;;  %v2056_v17 = vld [vmem:[#allocation6 + $0x260] ss:$8 sps:$4 sm:$0xff]  }
 0x2bd   :  { %2102 = vtanh.f32 %v554_v18 }
 0x2bf   :  { %v634_v21 = vpop.f32.mrb[8].mxu0 }
 0x2c0   :  { %v635_v22 = vadd.f32 %v634_v21, %v590_v19  ;;  %v636_v23 = vpop.f32.mrb[9].mxu0  ;;  %v2059_v19 = vld [vmem:[#allocation6 + $0x270] ss:$8 sps:$4 sm:$0xff]   ;;  %v2062_v21 = vld [vmem:[#allocation6 + $0x280] ss:$8 sps:$4 sm:$0xff]  }
 0x2c1   :  { %v637_v24 = vadd.f32 %v636_v23, %v594_v20  ;;  %v638_v25 = vpop.f32.mrb[10].mxu0  ;;  %v2064_v20 = vld [vmem:[#allocation6 + $0x284] ss:$8 sps:$4 sm:$0xff]   ;;  %v2065_v23 = vld [vmem:[#allocation6 + $0x290] ss:$8 sps:$4 sm:$0xff]  }
 0x2c2   :  { %v641_v26 = vmax.f32 %v635_v22, 0.0  ;;  %v639_v27 = vpop.f32.mrb[11].mxu0  ;;  %v2067_v22 = vld [vmem:[#allocation6 + $0x294] ss:$8 sps:$4 sm:$0xff]   ;;  %v2068_v25 = vld [vmem:[#allocation6 + $0x2a0] ss:$8 sps:$4 sm:$0xff]  }
 0x2c3   :  { %v642_v28 = vmax.f32 %v637_v24, 0.0  ;;  %v2070_v24 = vld [vmem:[#allocation6 + $0x2a4] ss:$8 sps:$4 sm:$0xff]   ;;  %v2071_v27 = vld [vmem:[#allocation6 + $0x2b0] ss:$8 sps:$4 sm:$0xff]  }
 0x2c4   :  { %v643_v31 = vpack.c.bf16 %v641_v26, %v641_v26  ;;  %v2073_v26 = vld [vmem:[#allocation6 + $0x2b4] ss:$8 sps:$4 sm:$0xff]  }
 0x2c5   :  { %v644_v29 = vpack.c.bf16 %v642_v28, %v642_v28  ;;  %v2076_v28 = vld [vmem:[#allocation6 + $0x2c4] ss:$8 sps:$4 sm:$0xff]  }
 0x2c7   :  { %v2103_v32 = vpop.eup %2102  ;;  %883 = vmatprep.mubr.bf16.mxu0 %v644_v29  ;;  %v2074_v29 = vld [vmem:[#allocation6 + $0x2c0] ss:$8 sps:$4 sm:$0xff]  }
 0x2c8   :  { %v560_v33 = vadd.f32 1.0, %v2103_v32  ;;  %884 = vmatmul.mubr.bf16.vlgmr.msra.gmra.mrb[12].mxu0 %v643_v31  ;;  %v2077_v31 = vld [vmem:[#allocation6 + $0x2d0] ss:$8 sps:$4 sm:$0xff]   ;;  %v1096_v32 = vrot.slane %v2416_v56, %v2288_v51 }
 0x2c9   :  { %1107 = vmatpush1.bf16.msra.mxu0 %v2019_v30  ;;  %1138 = vmatprep.mubr.bf16.mxu0 %v2174_v2  ;;  %v2035_v2 = vld [vmem:[%s2510_s6 + $0xb0] sm:$0xff]   ;;  %v2100_v56 = vld [vmem:[%s2510_s6 + $0x178] sm:$0xff]  }
 0x2ca   :  { %v561_v35 = vmul.f32 3.5, %v560_v33  ;;  %1863 = vmatpush3.bf16.msra.mxu1 %v2035_v2  ;;  %v2079_v30 = vld [vmem:[#allocation6 + $0x2d4] ss:$8 sps:$4 sm:$0xff]   ;;  %v2082_v33 = vld [vmem:[#allocation6 + $0x2e4] ss:$8 sps:$4 sm:$0xff]  }
 0x2cb   :  { %1864 = vmatprep.subr.bf16.mxu1 %v2036_v40  ;;  %v2086_v2 = vld [vmem:[%s2510_s6 + $0x140] sm:$0xff]  }
 0x2cc   :  { %v562_v36 = vadd.f32 -5.0, %v561_v35  ;;  %v2087_v40 = vld [vmem:[%s2510_s6 + $0x100] sm:$0xff]   ;;  %1872 = vmatprep.subr.bf16.mxu0 %v2086_v2 }
 0x2ce   :  { %v563_v38 = vsel %vm60_vm1, %v562_v36, %v554_v18  ;;  %1865 = vmatpush3.bf16.msra.mxu1 %v2037_v41  ;;  %v2061_v18 = vld [vmem:[#allocation6 + $0x274] ss:$8 sps:$4 sm:$0xff]   ;;  %v2088_v41 = vld [vmem:[%s2510_s6 + $0x148] sm:$0xff]  }
 0x2cf   :  { %566 = vst.msk [vmem:[%s564_s2] sm:$0x1] %vm565_vm3, %v563_v38  ;;  %1357 = vmatprep.subr.bf16.mxu1 %v2040_v42  ;;  %v2085_v36 = vld [vmem:[#allocation6 + $0x2f4] ss:$8 sps:$4 sm:$0xff]   ;;  %v2089_v42 = vld [vmem:[%s2510_s6 + $0x108] sm:$0xff]  }
 0x2d0   :  { %1746 = vmatmul.mubr.msk.bf16.vlgmr.msra.gmra.mrb[16].mxu0 %vm92_vm0, %v1076_v37  ;;  %v2083_v37 = vld [vmem:[#allocation6 + $0x2f0] ss:$8 sps:$4 sm:$0xff]  }
 0x2d1   :  { %1873 = vmatpush3.bf16.msra.mxu0 %v2087_v40 }
 0x2d2   :  { %1874 = vmatprep.subr.bf16.mxu0 %v2088_v41 }
 0x2d5   :  { %1875 = vmatpush3.bf16.msra.mxu0 %v2089_v42 }
 0x2d6   :  { %1876 = vmatprep.subr.bf16.mxu0 %v2090_v43 }
 0x39b   :  { %v885_v46 = vpop.f32.mrb[12].mxu0 }
 0x39c   :  { %v886_v47 = vadd.f32 %v885_v46, %v844_v44  ;;  %v887_v48 = vpop.f32.mrb[13].mxu0  ;;  %v2091_v44 = vld [vmem:[%s2510_s6 + $0x110] sm:$0xff]   ;;  %v2093_v46 = vld [vmem:[%s2510_s6 + $0x118] sm:$0xff]  }
 0x39d   :  { %v888_v50 = vadd.f32 %v887_v48, %v848_v45  ;;  %v889_v52 = vpop.f32.mrb[14].mxu0  ;;  %v2092_v45 = vld [vmem:[%s2510_s6 + $0x158] sm:$0xff]   ;;  %1877 = vmatpush3.bf16.msra.mxu0 %v2091_v44  ;;  %v2095_v48 = vld [vmem:[%s2510_s6 + $0x120] sm:$0xff]  }
 0x39e   :  { %v892_v54 = vmax.f32 %v886_v47, 0.0  ;;  %v890_v55 = vpop.f32.mrb[15].mxu0  ;;  %1878 = vmatprep.subr.bf16.mxu0 %v2092_v45  ;;  %v2094_v47 = vld [vmem:[%s2510_s6 + $0x160] sm:$0xff]   ;;  %v2097_v52 = vld [vmem:[%s2510_s6 + $0x128] sm:$0xff]  }
 0x39f   :  { %v893_v57 = vmax.f32 %v888_v50, 0.0  ;;  %v2096_v50 = vld [vmem:[%s2510_s6 + $0x168] sm:$0xff]   ;;  %v2099_v55 = vld [vmem:[%s2510_s6 + $0x130] sm:$0xff]  }
 0x3a0   :  { %v894_v62 = vpack.c.bf16 %v892_v54, %v892_v54  ;;  %v2098_v54 = vld [vmem:[%s2510_s6 + $0x170] sm:$0xff]  }
 0x3a1   :  { %v895_v58 = vpack.c.bf16 %v893_v57, %v893_v57  ;;  %1879 = vmatpush3.bf16.msra.mxu0 %v2093_v46  ;;  %v2101_v57 = vld [vmem:[%s2510_s6 + $0x138] sm:$0xff]   ;;  %s1071_s6 = scalar_lea.vmem [#allocation7], %s2317_s22 }
 0x3a2   :  { %1880 = vmatprep.subr.bf16.mxu0 %v2094_v47 }
 0x3a3   :  { %1058 = vmatprep.mubr.bf16.mxu1 %v895_v58  ;;  %v2420_v49 = vpop.f32.mrb[16].mxu0 }
 0x3a4   :  { %1059 = vmatmul.mubr.bf16.vlgmr.msra.gmra.mrb[4].mxu1 %v894_v62  ;;  %v1142_v0 = vpop.f32.mrb[17].mxu0  ;;  %v1141_v35 = vadd.f32 %v2420_v49, %v1096_v32 }
 0x3a5   :  { %1358 = vmatpush1.bf16.msra.mxu1 %v2038_v60  ;;  %v1143_v3 = vadd.f32 %v1142_v0, %v1100_v61  ;;  %v1144_v4 = vpop.f32.mrb[18].mxu0  ;;  %1881 = vmatpush3.bf16.msra.mxu0 %v2095_v48  ;;  %v929_v60 = vld [vmem:[%s2511_s7 + $0x1] sm:$0x1] }
 0x3a6   :  { %1359 = vmatprep.subr.bf16.mxu1 %v2043_v63  ;;  %v1145_v6 = vpop.f32.mrb[19].mxu0  ;;  %v1147_v38 = vmax.f32 %v1141_v35, 0.0  ;;  %1882 = vmatprep.subr.bf16.mxu0 %v2096_v50 }
 0x3a7   :  { %v1148_v7 = vmax.f32 %v1143_v3, 0.0 }
 0x3a8   :  { %v1149_v39 = vpack.c.bf16 %v1147_v38, %v1147_v38 }
 0x3a9   :  { %1360 = vmatpush1.bf16.msra.mxu1 %v2041_v1  ;;  %v1150_v9 = vpack.c.bf16 %v1148_v7, %v1148_v7  ;;  %1883 = vmatpush3.bf16.msra.mxu0 %v2097_v52  ;;  %v1747_v7 = vld [vmem:[%s2509_s5 + $0x2] ss:$4 sm:$0x3]  ;;  %s2176_s5 = smov [#allocation7]  }
 0x3aa   :  { %1361 = vmatprep.subr.bf16.mxu1 %v2046_v5  ;;  %1884 = vmatprep.subr.bf16.mxu0 %v2098_v54  ;;  %s1585_s2 = sshll.u32 %s2176_s5, 4  ;;  %s1586_s2 = int_to_ptr.vmem [resolvable:$true] %s1585_s2 }
 0x3ab   :  { %1389 = vmatprep.mubr.bf16.mxu1 %v1150_v9  ;;  %v1354_v9 = vrot.slane %v1747_v7, %v2293_v53  ;;  %p2147_p0 = scmp.lt.s32.totalorder %s1586_s2, %s1586_s2 }
 0x3ad   :  { %1362 = vmatpush1.bf16.msra.mxu1 %v2044_v8  ;;  %1885 = vmatpush3.bf16.msra.mxu0 %v2099_v55  ;;  %v1350_v8 = vrot.slane %v1747_v7, %v2288_v51  ;;  %v1435_v51 = vld [vmem:[%s2511_s7 + $0x2] sm:$0x1]  ;;  %s2142_s7 = scalar_lea.vmem %s1586_s2, 128 }
 0x3ae   :  { %1363 = vmatprep.subr.bf16.mxu1 %v2049_v10  ;;  %1886 = vmatprep.subr.bf16.mxu0 %v2100_v56  ;;  %p2143_p13 = scmp.ne.s32.totalorder %s1586_s2, %s2142_s7  ;;  %p2148_p1 = scmp.lt.s32.totalorder %s2142_s7, %s2142_s7 }
 0x3b0   :  { %p2149_p2 = por %p2148_p1, %p2147_p0 }
 0x3b1   :  { %1364 = vmatpush1.bf16.msra.mxu1 %v2047_v11  ;;  %1887 = vmatpush3.bf16.msra.mxu0 %v2101_v57 }
 0x3b2   :  { %1365 = vmatprep.subr.bf16.mxu1 %v2052_v12  ;;  %p2150_p3 = pnand %p2149_p2, %p2143_p13 }
 0x3b5   :  { %1366 = vmatpush1.bf16.msra.mxu1 %v2050_v13 }
 0x3b6   :  { %1367 = vmatprep.subr.bf16.mxu1 %v2055_v14 }
 0x3b9   :  { %1368 = vmatpush1.bf16.msra.mxu1 %v2053_v15 }
 0x3ba   :  { %1369 = vmatprep.subr.bf16.mxu1 %v2058_v16 }
 0x3bd   :  { %1370 = vmatpush1.bf16.msra.mxu1 %v2056_v17 }
 0x3be   :  { %1371 = vmatprep.subr.bf16.mxu1 %v2061_v18 }
 0x3c1   :  { %1372 = vmatpush1.bf16.msra.mxu1 %v2059_v19 }
 0x3c2   :  { %1373 = vmatprep.subr.bf16.mxu1 %v2064_v20 }
 0x3c5   :  { %1374 = vmatpush1.bf16.msra.mxu1 %v2062_v21 }
 0x3c6   :  { %1375 = vmatprep.subr.bf16.mxu1 %v2067_v22 }
 0x3c9   :  { %1376 = vmatpush1.bf16.msra.mxu1 %v2065_v23 }
 0x3ca   :  { %1377 = vmatprep.subr.bf16.mxu1 %v2070_v24 }
 0x3cd   :  { %1378 = vmatpush1.bf16.msra.mxu1 %v2068_v25 }
 0x3ce   :  { %1379 = vmatprep.subr.bf16.mxu1 %v2073_v26 }
 0x3d1   :  { %1380 = vmatpush1.bf16.msra.mxu1 %v2071_v27 }
 0x3d2   :  { %1381 = vmatprep.subr.bf16.mxu1 %v2076_v28 }
 0x3d5   :  { %1382 = vmatpush1.bf16.msra.mxu1 %v2074_v29 }
 0x3d6   :  { %1383 = vmatprep.subr.bf16.mxu1 %v2079_v30 }
 0x3d9   :  { %1384 = vmatpush1.bf16.msra.mxu1 %v2077_v31 }
 0x3da   :  { %1385 = vmatprep.subr.bf16.mxu1 %v2082_v33 }
 0x3dd   :  { %1386 = vmatpush1.bf16.msra.mxu1 %v2080_v34 }
 0x3de   :  { %1387 = vmatprep.subr.bf16.mxu1 %v2085_v36 }
 0x3e1   :  { %1388 = vmatpush1.bf16.msra.mxu1 %v2083_v37 }
 0x3e4   :  { %1390 = vmatmul.mubr.bf16.vlgmr.msra.gmra.mrb[8].mxu1 %v1149_v39 }
 0x477   :  { %v1866_v58 = vpop.f32.mrb[4].mxu1 }
 0x478   :  { %v1867_v61 = vpop.f32.mrb[5].mxu1 }
 0x479   :  { %v1868_v62 = vadd.f32 %v1867_v61, %v1866_v58  ;;  %v1869_v63 = vpop.f32.mrb[6].mxu1 }
 0x47a   :  { %v1870_v49 = vpop.f32.mrb[7].mxu1 }
 0x47b   :  { %v1061_v0 = vadd.f32 %v1868_v62, %v929_v60 }
 0x47d   :  { %2104 = vtanh.f32 %v1061_v0 }
 0x487   :  { %v2105_v1 = vpop.eup %2104 }
 0x488   :  { %v1067_v3 = vadd.f32 1.0, %v2105_v1 }
 0x48a   :  { %v1068_v4 = vmul.f32 3.5, %v1067_v3 }
 0x48c   :  { %v1069_v5 = vadd.f32 -5.0, %v1068_v4 }
 0x48e   :  { %v1070_v6 = vsel %vm60_vm1, %v1069_v5, %v1061_v0 }
 0x48f   :  { %1072 = vst.msk [vmem:[%s1071_s6] sm:$0x1] %vm565_vm3, %v1070_v6 }
 0x4b7   :  { %v1391_v10 = vpop.f32.mrb[8].mxu1 }
 0x4b8   :  { %v1392_v11 = vadd.f32 %v1391_v10, %v1350_v8  ;;  %v1393_v12 = vpop.f32.mrb[9].mxu1 }
 0x4b9   :  { %v1394_v13 = vadd.f32 %v1393_v12, %v1354_v9  ;;  %v1395_v14 = vpop.f32.mrb[10].mxu1 }
 0x4ba   :  { %v1398_v15 = vmax.f32 %v1392_v11, 0.0  ;;  %v1396_v16 = vpop.f32.mrb[11].mxu1 }
 0x4bb   :  { %v1399_v17 = vmax.f32 %v1394_v13, 0.0 }
 0x4bc   :  { %v1400_v19 = vpack.c.bf16 %v1398_v15, %v1398_v15 }
 0x4bd   :  { %v1401_v18 = vpack.c.bf16 %v1399_v17, %v1399_v17 }
 0x4bf   :  { %1564 = vmatprep.mubr.bf16.mxu0 %v1401_v18 }
 0x4c0   :  { %1565 = vmatmul.mubr.bf16.vlgmr.msra.gmra.mrb[20].mxu0 %v1400_v19 }
 0x593   :  { %v1888_v20 = vpop.f32.mrb[20].mxu0 }
 0x594   :  { %v1889_v21 = vpop.f32.mrb[21].mxu0 }
 0x595   :  { %v1890_v53 = vadd.f32 %v1889_v21, %v1888_v20  ;;  %v1891_v22 = vpop.f32.mrb[22].mxu0 }
 0x596   :  { %v1892_v23 = vpop.f32.mrb[23].mxu0 }
 0x597   :  { %v1567_v24 = vadd.f32 %v1890_v53, %v1435_v51 }
 0x599   :  { %2106 = vtanh.f32 %v1567_v24 }
 0x5a3   :  { %v2107_v25 = vpop.eup %2106 }
 0x5a4   :  { %v1573_v26 = vadd.f32 1.0, %v2107_v25 }
 0x5a6   :  { %v1574_v27 = vmul.f32 3.5, %v1573_v26 }
 0x5a8   :  { %v1575_v28 = vadd.f32 -5.0, %v1574_v27 }
 0x5aa   :  { %v1576_v29 = vsel %vm60_vm1, %v1575_v28, %v1567_v24 }
 0x5ab   :  { %1578 = vst.msk [vmem:[%s1577_s1] sm:$0x1] %vm565_vm3, %v1576_v29 }
 0x5ac   :  { %2153 = shalt.err (!%p2150_p3)
}
 0x5ad   :  { %s2154_s21 = scalar_lea.hbm %s2512_s8, 128 }
 0x5ae   :  { %p2155_p4 = scmp.ne.s32.totalorder %s2512_s8, %s2154_s21  ;;  %p2158_p5 = scmp.lt.u32.totalorder %s2154_s21, %s2512_s8 }
 0x5b0   :  { %p2160_p6 = pnand %p2158_p5, %p2155_p4 }
 0x5b2   :  { %2163 = shalt.err (!%p2160_p6)
}
 0x5b3   :  { %1588 = dma.vmem_to_hbm [thread:$0]  %s1586_s2, 128, %s2512_s8, [#allocation4]  }
 0x5b4   :  { %2168 = dma.done.wait [#allocation4], 128  }
 0x5b5   :  { %2169 = vsyncadd [#allocation4], 4294967168 }
 0x5b6   :  { %1592 = vsyncpa [#allocation3], 1 }
 0x5b7   :  { %1593 = vsyncpa [#allocation4], 1 }
 0x5b8   :  { %1594 = vsyncpa [#allocation5], 1 }

</bundles_post_ra>
